<compile_context>
chip_gen: v5e
topology: v5e:2x2
jax: 0.10.0
libtpu: 0.0.40
codegen_flags: <defaults>
</compile_context>

<pallas_src>
import functools

import jax
import jax.numpy as jnp
import numpy as np
from jax import lax
from jax.experimental import pallas as pl
from jax.experimental.pallas import tpu as pltpu


def _gelu_exact(x):
    # erf-based GELU, matching torch.nn.functional.gelu default.
    return 0.5 * x * (1.0 + lax.erf(x / jnp.sqrt(2.0).astype(x.dtype)))


def _round_up(v, m):
    return (v + m - 1) // m * m


def _vmem_capacity_bytes():
    try:
        return int(pltpu.get_tpu_info().vmem_capacity_bytes)
    except Exception:
        return 64 << 20  # conservative fallback: v7x per-TensorCore VMEM


def _pick_tm(n, d, hp, op, mm_bytes, out_bytes, budget_bytes):
    """Largest row tile that fits the VMEM budget, keeps row-pad waste bounded,
    and (when possible) yields >= 2 grid steps so both v7x TensorCores get work."""
    n8 = _round_up(max(n, 1), 8)
    # Pallas allocates 2 pipeline buffers per input even for constant index_maps,
    # so the resident weights/biases count twice.
    resident = 2 * ((d * hp + hp * op) * mm_bytes + (hp + op) * 4)
    fallback = None
    for tm in (1024, 512, 256, 128, 64, 32, 16, 8):
        if tm > n8:
            continue
        np_ = _round_up(n, tm)
        # Bound row-padding waste: padded rows are pure extra HBM traffic in a
        # memory-bound kernel.  tm=8 stays allowed as the last resort.
        if tm > 8 and (np_ - n) / max(n, 1) > 0.125:
            continue
        streamed = 2 * tm * (d * mm_bytes + op * out_bytes)  # double-buffered x / out
        interm = tm * hp * 4 + tm * op * 4                   # f32 intermediates
        if resident + streamed + interm > budget_bytes:
            continue
        if np_ // tm >= 2:       # prefer multi-step grids (megacore on v7x)
            return tm
        if fallback is None:     # largest single-step candidate, if nothing better
            fallback = tm
    return fallback if fallback is not None else 8


def nonlinear_head_kernel(x_ref, w1_ref, b1_ref, w2_ref, b2_ref, o_ref, *, sub):
    # x_ref:  (tm, D)     w1_ref: (D, Hp)   b1_ref: (1, Hp)  [f32]
    # w2_ref: (Hp, Op)    b2_ref: (1, Op)   [f32]            o_ref: (tm, Op)
    tm = x_ref.shape[0]
    nsub = tm // sub

    def do_block(r):
        xb = x_ref[pl.ds(r, sub), :]
        h = jnp.dot(xb, w1_ref[...], preferred_element_type=jnp.float32)
        h = _gelu_exact(h + b1_ref[...])  # bias add + GELU in f32 (v5e-safe)
        out = jnp.dot(h.astype(w2_ref.dtype), w2_ref[...],
                      preferred_element_type=jnp.float32) + b2_ref[...]
        o_ref[pl.ds(r, sub), :] = out.astype(o_ref.dtype)

    if nsub == 1:
        do_block(0)
    else:
        # Sub-blocking lets the MXU (2nd dot of block j) overlap the EUP/VPU
        # GELU of block j+1 when the kernel is compute-bound.
        def body(j, carry):
            do_block(pl.multiple_of(j * sub, sub))
            return carry

        lax.fori_loop(0, nsub, body, 0, unroll=True)


@functools.partial(jax.jit, static_argnames=("out_dim", "tm"))
def _nonlinear_head_padded(x, w1p, b1p, w2p, b2p, *, out_dim, tm=None):
    """x: [N, D]; pre-padded params: w1p [D, Hp], b1p [1, Hp], w2p [Hp, Op],
    b2p [1, Op].  Returns [N, out_dim] in x.dtype."""
    N, D = x.shape
    Hp = w1p.shape[1]
    Op = w2p.shape[1]
    out_dtype = x.dtype
    mm_dtype = w1p.dtype
    mm_bytes = jnp.dtype(mm_dtype).itemsize
    out_bytes = jnp.dtype(out_dtype).itemsize

    vmem_cap = _vmem_capacity_bytes()
    vmem_limit = (vmem_cap * 7) // 8              # headroom for compiler scratch
    if tm is None:
        tm = _pick_tm(N, D, Hp, Op, mm_bytes, out_bytes,
                      budget_bytes=(vmem_cap * 3) // 4)
    Np = _round_up(N, tm)

    xp = x.astype(mm_dtype)
    if Np != N:
        xp = jnp.pad(xp, ((0, Np - N), (0, 0)))

    sub = 256 if (tm > 256 and tm % 256 == 0) else tm

    cost = pl.CostEstimate(
        flops=2 * Np * D * Hp + 2 * Np * Hp * Op,
        transcendentals=Np * Hp,  # erf in GELU
        bytes_accessed=(xp.size * xp.dtype.itemsize
                        + w1p.size * w1p.dtype.itemsize
                        + w2p.size * w2p.dtype.itemsize
                        + b1p.size * 4 + b2p.size * 4
                        + Np * Op * out_bytes),
    )

    out = pl.pallas_call(
        functools.partial(nonlinear_head_kernel, sub=sub),
        out_shape=jax.ShapeDtypeStruct((Np, Op), out_dtype),
        grid_spec=pltpu.PrefetchScalarGridSpec(
            num_scalar_prefetch=0,
            grid=(Np // tm,),
            in_specs=[
                pl.BlockSpec((tm, D), lambda i: (i, 0)),    # x rows (streamed)
                pl.BlockSpec((D, Hp), lambda i: (0, 0)),    # W1 (resident)
                pl.BlockSpec((1, Hp), lambda i: (0, 0)),    # b1 (f32)
                pl.BlockSpec((Hp, Op), lambda i: (0, 0)),   # W2 (resident)
                pl.BlockSpec((1, Op), lambda i: (0, 0)),    # b2 (f32)
            ],
            out_specs=pl.BlockSpec((tm, Op), lambda i: (i, 0)),
        ),
        compiler_params=pltpu.CompilerParams(
            dimension_semantics=("parallel",),  # shard row loop across TCs (v7x)
            vmem_limit_bytes=int(vmem_limit),
        ),
        cost_estimate=cost,
    )(xp, w1p, b1p, w2p, b2p)

    return out[:N, :out_dim]


def make_nonlinear_head(w1, b1, w2, b2, *, matmul_dtype=jnp.bfloat16, tm=None):
    """Pre-pad / cast parameters once ("model init") and return apply(x).

    w1: [D, H], b1: [H], w2: [H, O], b2: [O]  (weights already [in, out]).
    matmul_dtype: operand dtype for both MXU matmuls (accumulation stays f32).
    """
    D, H = w1.shape
    O = w2.shape[1]
    mm_dtype = jnp.dtype(matmul_dtype)

    Hp = _round_up(H, 128)  # lane-dense hidden (resident weights only; cheap)
    Op128 = _round_up(O, 128)
    # Lane-dense output only when padding inflates the HBM writeback by <= 2x;
    # for tiny O (e.g. 16 -> 128 would be 8x write inflation) keep O unpadded
    # and take the masked-store path instead.
    Op = Op128 if Op128 <= 2 * O else O

    # Padded hidden columns contribute exactly 0: w1 pad cols are 0, b1 pad is 0,
    # gelu(0) = 0, and w2's padded rows are 0 anyway.
    w1p = jnp.zeros((D, Hp), mm_dtype).at[:, :H].set(w1.astype(mm_dtype))
    b1p = jnp.zeros((1, Hp), jnp.float32).at[:, :H].set(b1.astype(jnp.float32))
    w2p = jnp.zeros((Hp, Op), mm_dtype).at[:H, :O].set(w2.astype(mm_dtype))
    b2p = jnp.zeros((1, Op), jnp.float32).at[:, :O].set(b2.astype(jnp.float32))
    # Materialize the padded params now, once — not on every jitted call.
    w1p, b1p, w2p, b2p = jax.block_until_ready((w1p, b1p, w2p, b2p))

    def apply(x):
        return _nonlinear_head_padded(x, w1p, b1p, w2p, b2p, out_dim=O, tm=tm)

    return apply


def reference(x, w1, b1, w2, b2):
    h = x @ w1 + b1
    h = _gelu_exact(h)
    return h @ w2 + b2


if __name__ == "__main__":
    # NonLinearHead(input_dim=32, out_dim=16, activation_fn="gelu", hidden=None)
    # -> hidden = input_dim = 32.
    N, D, H, O = 8, 32, 32, 16

    key = jax.random.PRNGKey(0)
    kx, k1, kb1, k2, kb2 = jax.random.split(key, 5)

    x = jax.random.normal(kx, (N, D), dtype=jnp.float32)

    lim1 = 1.0 / np.sqrt(D)
    lim2 = 1.0 / np.sqrt(H)
    # Weights stored already transposed to [in, out] for the kernel
    # (PyTorch nn.Linear stores [out, in]).
    w1 = jax.random.uniform(k1, (D, H), minval=-lim1, maxval=lim1, dtype=jnp.float32)
    b1 = jax.random.uniform(kb1, (H,), minval=-lim1, maxval=lim1, dtype=jnp.float32)
    w2 = jax.random.uniform(k2, (H, O), minval=-lim2, maxval=lim2, dtype=jnp.float32)
    b2 = jax.random.uniform(kb2, (O,), minval=-lim2, maxval=lim2, dtype=jnp.float32)

    ref = reference(x, w1, b1, w2, b2)

    # Exact f32 matmul path: tight tolerance.
    head_f32 = make_nonlinear_head(w1, b1, w2, b2, matmul_dtype=jnp.float32)
    out = jax.block_until_ready(head_f32(x))
    np.testing.assert_allclose(np.asarray(out), np.asarray(ref), rtol=1e-5, atol=1e-5)

    # Default path: bf16 matmul operands (MXU fast path on all gens), f32 accum.
    head_bf16 = make_nonlinear_head(w1, b1, w2, b2)
    out_bf16 = jax.block_until_ready(head_bf16(x))
    np.testing.assert_allclose(np.asarray(out_bf16), np.asarray(ref),
                               rtol=3e-2, atol=3e-2)

    # Multi-tile + row-padding path (grid > 1, N not a multiple of the tile).
    N2 = 136
    x2 = jax.random.normal(jax.random.PRNGKey(1), (N2, D), dtype=jnp.float32)
    out2 = jax.block_until_ready(head_f32(x2))
    ref2 = reference(x2, w1, b1, w2, b2)
    np.testing.assert_allclose(np.asarray(out2), np.asarray(ref2), rtol=1e-5, atol=1e-5)

    print("KERNEL_OK")
</pallas_src>

<mosaic_0001>
module attributes {stable_mosaic.version = 11 : i64} {
  func.func @nonlinear_head_kernel(%arg0: i32, %arg1: memref<8x32xf32, #tpu.memory_space<vmem>>, %arg2: memref<32x128xf32, #tpu.memory_space<vmem>>, %arg3: memref<1x128xf32, #tpu.memory_space<vmem>>, %arg4: memref<128x16xf32, #tpu.memory_space<vmem>>, %arg5: memref<1x16xf32, #tpu.memory_space<vmem>>, %arg6: memref<8x16xf32, #tpu.memory_space<vmem>>) attributes {dimension_semantics = [#tpu.dimension_semantics<parallel>], iteration_bounds = array<i64: 1>, scalar_prefetch = 0 : i64, scratch_operands = 0 : i64, tpu.core_type = #tpu.core_type<tc>, window_params = [{transform_indices = @transform_0, window_bounds = array<i64: 8, 32>}, {pipeline_mode = #tpu.pipeline_mode<synchronous>, transform_indices = @transform_1, window_bounds = array<i64: 32, 128>}, {pipeline_mode = #tpu.pipeline_mode<synchronous>, transform_indices = @transform_2, window_bounds = array<i64: 1, 128>}, {pipeline_mode = #tpu.pipeline_mode<synchronous>, transform_indices = @transform_3, window_bounds = array<i64: 128, 16>}, {pipeline_mode = #tpu.pipeline_mode<synchronous>, transform_indices = @transform_4, window_bounds = array<i64: 1, 16>}, {transform_indices = @transform_5, window_bounds = array<i64: 8, 16>}]} {
    %c0 = arith.constant 0 : index
    %c0_0 = arith.constant 0 : index
    %0 = vector.load %arg1[%c0, %c0_0] : memref<8x32xf32, #tpu.memory_space<vmem>>, vector<8x32xf32>
    %c0_1 = arith.constant 0 : index
    %c0_2 = arith.constant 0 : index
    %1 = vector.load %arg2[%c0_1, %c0_2] : memref<32x128xf32, #tpu.memory_space<vmem>>, vector<32x128xf32>
    %cst = arith.constant dense<0.000000e+00> : vector<8x128xf32>
    %2 = tpu.matmul %0, %1, %cst {dimension_numbers = #tpu.dot_dimension_numbers<[1], [0], [0], [1], [0, 0, 1, 1], [], []>} : vector<8x32xf32>, vector<32x128xf32>, vector<8x128xf32> -> vector<8x128xf32>
    %c0_3 = arith.constant 0 : index
    %c0_4 = arith.constant 0 : index
    %3 = vector.load %arg3[%c0_3, %c0_4] : memref<1x128xf32, #tpu.memory_space<vmem>>, vector<1x128xf32>
    %4 = vector.broadcast %3 : vector<1x128xf32> to vector<8x128xf32>
    %5 = arith.addf %2, %4 : vector<8x128xf32>
    %cst_5 = arith.constant 5.000000e-01 : f32
    %6 = vector.broadcast %cst_5 : f32 to vector<8x128xf32>
    %7 = arith.mulf %6, %5 : vector<8x128xf32>
    %cst_6 = arith.constant 2.000000e+00 : f32
    %8 = math.sqrt %cst_6 : f32
    %9 = vector.broadcast %8 : f32 to vector<8x128xf32>
    %10 = arith.divf %5, %9 : vector<8x128xf32>
    %11 = math.erf %10 : vector<8x128xf32>
    %cst_7 = arith.constant 1.000000e+00 : f32
    %12 = vector.broadcast %cst_7 : f32 to vector<8x128xf32>
    %13 = arith.addf %12, %11 : vector<8x128xf32>
    %14 = arith.mulf %7, %13 : vector<8x128xf32>
    %c0_8 = arith.constant 0 : index
    %c0_9 = arith.constant 0 : index
    %15 = vector.load %arg4[%c0_8, %c0_9] : memref<128x16xf32, #tpu.memory_space<vmem>>, vector<128x16xf32>
    %cst_10 = arith.constant dense<0.000000e+00> : vector<8x16xf32>
    %16 = tpu.matmul %14, %15, %cst_10 {dimension_numbers = #tpu.dot_dimension_numbers<[1], [0], [0], [1], [0, 0, 1, 1], [], []>} : vector<8x128xf32>, vector<128x16xf32>, vector<8x16xf32> -> vector<8x16xf32>
    %c0_11 = arith.constant 0 : index
    %c0_12 = arith.constant 0 : index
    %17 = vector.load %arg5[%c0_11, %c0_12] : memref<1x16xf32, #tpu.memory_space<vmem>>, vector<1x16xf32>
    %18 = vector.broadcast %17 : vector<1x16xf32> to vector<8x16xf32>
    %19 = arith.addf %16, %18 : vector<8x16xf32>
    %c0_13 = arith.constant 0 : index
    %c0_14 = arith.constant 0 : index
    %20 = vector.load %arg6[%c0_13, %c0_14] : memref<8x16xf32, #tpu.memory_space<vmem>>, vector<8x16xf32>
    tpu.vector_store %arg6[%c0_13, %c0_14], %19 {strides = array<i32>} : memref<8x16xf32, #tpu.memory_space<vmem>>, vector<8x16xf32>,
    return
  }
  func.func @transform_0(%arg0: i32) -> (i32, i32) {
    %c0_i32 = arith.constant 0 : i32
    %c0_i32_0 = arith.constant 0 : i32
    return %arg0, %c0_i32 : i32, i32
  }
  func.func @transform_1(%arg0: i32) -> (i32, i32) {
    %c0_i32 = arith.constant 0 : i32
    %c0_i32_0 = arith.constant 0 : i32
    %c0_i32_1 = arith.constant 0 : i32
    return %c0_i32, %c0_i32_0 : i32, i32
  }
  func.func @transform_2(%arg0: i32) -> (i32, i32) {
    %c0_i32 = arith.constant 0 : i32
    %c0_i32_0 = arith.constant 0 : i32
    %c0_i32_1 = arith.constant 0 : i32
    return %c0_i32, %c0_i32_0 : i32, i32
  }
  func.func @transform_3(%arg0: i32) -> (i32, i32) {
    %c0_i32 = arith.constant 0 : i32
    %c0_i32_0 = arith.constant 0 : i32
    %c0_i32_1 = arith.constant 0 : i32
    return %c0_i32, %c0_i32_0 : i32, i32
  }
  func.func @transform_4(%arg0: i32) -> (i32, i32) {
    %c0_i32 = arith.constant 0 : i32
    %c0_i32_0 = arith.constant 0 : i32
    %c0_i32_1 = arith.constant 0 : i32
    return %c0_i32, %c0_i32_0 : i32, i32
  }
  func.func @transform_5(%arg0: i32) -> (i32, i32) {
    %c0_i32 = arith.constant 0 : i32
    %c0_i32_0 = arith.constant 0 : i32
    return %arg0, %c0_i32 : i32, i32
  }
}

</mosaic_0001>

<bundles_post_ra>
// kernel: _nonlinear_head_padded.1
= control target key start
LH: loop header
LB: loop body
LE: loop exit
PB: predicated region body
PF: predicated region fallthrough
CT: control target
= control target key end

     0   :  { %s303_s0 = inlined_call_operand.vmem [shape: f32[8,32], index: 0, kind: input, shape index: {}]   ;;  %s304_s1 = inlined_call_operand.vmem [shape: f32[32,128], index: 1, kind: input, shape index: {}]   ;;  %s305_s2 = inlined_call_operand.vmem [shape: f32[1,128], index: 2, kind: input, shape index: {}]   ;;  %s306_s3 = inlined_call_operand.vmem [shape: f32[128,16], index: 3, kind: input, shape index: {}]   ;;  %s307_s4 = inlined_call_operand.vmem [shape: f32[1,16], index: 4, kind: input, shape index: {}]   ;;  %s308_s5 = inlined_call_operand.hbm [shape: f32[8,16], index: 5, kind: output, shape index: {}]  }
   0x1   :  { %v25_v0 = vld [vmem:[%s304_s1 + $0x18] sm:$0xff]  ;;  %v24_v1 = vld [vmem:[%s304_s1 + $0x10] sm:$0xff]  ;;  %v23_v2 = vld [vmem:[%s304_s1 + $0x8] sm:$0xff] }
   0x2   :  { %46 = vmatpush.msra.mxu0 %v25_v0 }
   0x3   :  { %10 = vsyncpa [#allocation3], 0  ;;  %v22_v3 = vld [vmem:[%s304_s1] sm:$0xff]  ;;  %vm30_vm0 = vcmask 261120   ;;  %v199_v5 = vmov 1.4142135  }
   0x4   :  { %47 = vmatpush.msra.mxu0 %v24_v1  ;;  %v21_v4 = vld [vmem:[%s303_s0] sm:$0xff]  ;;  %169 = vrcp.f32 %v199_v5  ;;  %v120_v9 = vld [vmem:[%s306_s3 + $0x78] sm:$0xff]  ;;  %v119_v11 = vld [vmem:[%s306_s3 + $0x70] sm:$0xff]  ;;  %s200_s8 = smov [#allocation2]   ;;  %s154_s12 = sshll.u32 %s308_s5, 4  ;;  %vm145_vm6 = vcmask 130048   ;;  %s155_s12 = int_to_ptr.hbm [resolvable:$true] %s154_s12 }
   0x5   :  { %125 = vmatpush.msra.mxu1 %v120_v9  ;;  %v118_v12 = vld [vmem:[%s306_s3 + $0x68] sm:$0xff]  ;;  %v117_v14 = vld [vmem:[%s306_s3 + $0x60] sm:$0xff]  ;;  %v116_v16 = vld [vmem:[%s306_s3 + $0x58] sm:$0xff]  ;;  %s152_s9 = sshll.u32 %s200_s8, 4  ;;  %s153_s9 = int_to_ptr.vmem [resolvable:$true] %s152_s9 }
   0x6   :  { %48 = vmatpush.msra.mxu0 %v23_v2  ;;  %v167_v15 = vld [vmem:[%s305_s2] ss:$0 sm:$0xff]  ;;  %v115_v17 = vld [vmem:[%s306_s3 + $0x50] sm:$0xff]  ;;  %v114_v20 = vld [vmem:[%s306_s3 + $0x48] sm:$0xff] }
   0x7   :  { %126 = vmatpush.msra.mxu1 %v119_v11  ;;  %v113_v22 = vld [vmem:[%s306_s3 + $0x40] sm:$0xff]  ;;  %v112_v24 = vld [vmem:[%s306_s3 + $0x38] sm:$0xff]  ;;  %v111_v26 = vld [vmem:[%s306_s3 + $0x30] sm:$0xff] }
   0x8   :  { %49 = vmatpush.msra.mxu0 %v22_v3  ;;  %v110_v28 = vld [vmem:[%s306_s3 + $0x28] sm:$0xff]  ;;  %v109_v31 = vld [vmem:[%s306_s3 + $0x20] sm:$0xff]  ;;  %v108_v34 = vld [vmem:[%s306_s3 + $0x18] sm:$0xff] }
   0x9   :  { %163 = vmatmul.msk.f32.vlgmr.msra.gmra.mxu0 %vm30_vm0, %v21_v4  ;;  %127 = vmatpush.msra.mxu1 %v118_v12  ;;  %v107_v37 = vld [vmem:[%s306_s3 + $0x10] sm:$0xff]  ;;  %v106_v40 = vld [vmem:[%s306_s3 + $0x8] sm:$0xff]  ;;  %v105_v42 = vld [vmem:[%s306_s3] sm:$0xff] }
   0xa   :  { %v170_v6 = vpop.eup %169 }
   0xb   :  { %v56_v7 = vmul.f32 1.4142135, %v170_v6  ;;  %vm60_vm1 = vweird.f32 %v170_v6  ;;  %128 = vmatpush.msra.mxu1 %v117_v14 }
   0xd   :  { %v57_v8 = vsub.f32 1.0, %v56_v7  ;;  %129 = vmatpush.msra.mxu1 %v116_v16 }
   0xf   :  { %v58_v10 = vmul.f32 %v170_v6, %v57_v8  ;;  %130 = vmatpush.msra.mxu1 %v115_v17 }
  0x11   :  { %v59_v13 = vadd.f32 %v170_v6, %v58_v10  ;;  %131 = vmatpush.msra.mxu1 %v114_v20 }
  0x13   :  { %v61_v19 = vsel %vm60_vm1, %v170_v6, %v59_v13  ;;  %132 = vmatpush.msra.mxu1 %v113_v22  ;;  %v168_v6 = vld [vmem:[%s307_s4] ss:$0 sm:$0xff] }
  0x15   :  { %133 = vmatpush.msra.mxu1 %v112_v24 }
  0x17   :  { %134 = vmatpush.msra.mxu1 %v111_v26 }
  0x19   :  { %135 = vmatpush.msra.mxu1 %v110_v28 }
  0x1b   :  { %136 = vmatpush.msra.mxu1 %v109_v31 }
  0x1d   :  { %137 = vmatpush.msra.mxu1 %v108_v34 }
  0x1f   :  { %138 = vmatpush.msra.mxu1 %v107_v37 }
  0x21   :  { %139 = vmatpush.msra.mxu1 %v106_v40 }
  0x23   :  { %140 = vmatpush.msra.mxu1 %v105_v42 }
  0x86   :  { %v51_v18 = vpop.f32.mrf.mxu0 }
  0x87   :  { %v52_v21 = vadd.f32 %v167_v15, %v51_v18 }
  0x89   :  { %v62_v23 = vmul.f32 %v61_v19, %v52_v21  ;;  %v54_v3 = vmul.f32 0.5, %v52_v21 }
  0x8b   :  { %v63_v25 = vmul.f32 %v62_v23, %v62_v23 }
  0x8d   :  { %v64_v27 = vmin.f32 %v63_v25, 16.0 }
  0x8f   :  { %v65_v29 = vmul.f32 2.1237322e-06, %v64_v27  ;;  %v76_v30 = vmul.f32 3.8918573e-05, %v64_v27 }
  0x91   :  { %v66_v32 = vadd.f32 0.00028619796, %v65_v29  ;;  %v77_v33 = vadd.f32 0.001143296, %v76_v30 }
  0x93   :  { %v67_v35 = vmul.f32 %v66_v32, %v64_v27  ;;  %v78_v36 = vmul.f32 %v77_v33, %v64_v27 }
  0x95   :  { %v79_v38 = vadd.f32 0.014752088, %v78_v36  ;;  %v68_v39 = vadd.f32 0.0036580483, %v67_v35 }
  0x97   :  { %v80_v41 = vmul.f32 %v79_v38, %v64_v27  ;;  %v69_v44 = vmul.f32 %v68_v39, %v64_v27 }
  0x99   :  { %v81_v43 = vadd.f32 0.112945676, %v80_v41  ;;  %v70_v47 = vadd.f32 0.05243302, %v69_v44 }
  0x9b   :  { %v82_v45 = vmul.f32 %v81_v43, %v64_v27  ;;  %v71_v50 = vmul.f32 %v70_v47, %v64_v27 }
  0x9d   :  { %v83_v46 = vadd.f32 0.4994258, %v82_v45  ;;  %v72_v51 = vadd.f32 0.18741608, %v71_v50 }
  0x9f   :  { %v84_v48 = vmul.f32 %v83_v46, %v64_v27  ;;  %v73_v53 = vmul.f32 %v72_v51, %v64_v27 }
  0xa1   :  { %v85_v49 = vadd.f32 1.0, %v84_v48  ;;  %v74_v57 = vadd.f32 1.1283791, %v73_v53 }
  0xa3   :  { %171 = vrcp.f32 %v85_v49  ;;  %v97_v56 = vand.u32 2147483648, %v85_v49  ;;  %v95_v59 = vand.u32 2147483647, %v85_v49  ;;  %vm91_vm3 = vweird.f32 %v85_v49 }
  0xa4   :  { %v75_v62 = vmul.f32 %v74_v57, %v62_v23 }
  0xa5   :  { %v98_v61 = vor.u32 1.1754944e-38, %v97_v56  ;;  %vm96_vm5 = vcmp.eq.f32.partialorder %v95_v59, 8.507059e+37 }
  0xa9   :  { %v172_v52 = vpop.eup %171 }
  0xaa   :  { %v87_v54 = vmul.f32 %v172_v52, %v85_v49  ;;  %vm92_vm2 = vweird.f32 %v172_v52 }
  0xab   :  { %vm93_vm4 = vmor %vm91_vm3, %vm92_vm2 }
  0xac   :  { %v88_v55 = vsub.f32 1.0, %v87_v54 }
  0xae   :  { %v89_v58 = vmul.f32 %v172_v52, %v88_v55 }
  0xb0   :  { %v90_v60 = vadd.f32 %v172_v52, %v89_v58 }
  0xb2   :  { %v94_v63 = vsel %vm93_vm4, %v172_v52, %v90_v60 }
  0xb3   :  { %v99_v0 = vsel %vm96_vm5, %v98_v61, %v94_v63 }
  0xb4   :  { %v100_v1 = vmul.f32 %v99_v0, %v75_v62 }
  0xb6   :  { %v164_v2 = vclamps-f32 %v100_v1, 1.0 }
  0xb8   :  { %v103_v4 = vadd.f32 1.0, %v164_v2 }
  0xba   :  { %v104_v5 = vmul.f32 %v103_v4, %v54_v3 }
  0xbc   :  { %141 = vmatmul.f32.vlgmr.msra.gmra.mxu1 %v104_v5 }
 0x139   :  { %v142_v7 = vpop.f32.mrf.mxu1 }
 0x13a   :  { %v143_v8 = vadd.f32 %v168_v6, %v142_v7 }
 0x13c   :  { %146 = vst.msk [vmem:[#allocation2] sm:$0xff] %vm145_vm6, %v143_v8 }
 0x13d   :  { %157 = dma.vmem_to_hbm [thread:$0]  %s153_s9, 128, %s155_s12, [#allocation3]  }
 0x13e   :  { %197 = dma.done.wait [#allocation3], 128  }
 0x13f   :  { %198 = vsyncadd [#allocation3], 4294967168 }
 0x140   :  { %162 = vsyncpa [#allocation3], 1 }

</bundles_post_ra>
